<compile_context>
chip_gen: v7x
topology: tpu7x:2x2x1
jax: 0.10.0
libtpu: 0.0.40
codegen_flags: <defaults>
</compile_context>

<pallas_src>
import jax
import jax.numpy as jnp
from jax.experimental import pallas as pl
from jax.experimental.pallas import tpu as pltpu


def se_kernel(x_ref, w1s_ref, w2_ref, o_ref):
    # x_ref : (tb, C, HW)   activations, HW lane-dense, C on sublanes
    # w1s_ref: (C, Cr)      = w1.T / HW  (f32, pre-scaled, pre-cast once)
    # w2_ref : (C, Cr)      = w2         (f32, native PyTorch (out,in) layout)
    tb, C, HW = x_ref.shape
    itemsize = jnp.dtype(x_ref.dtype).itemsize

    # --- Squeeze: global sum over HW (lane axis) with f32 accumulation. ------
    # The 1/HW factor is folded into w1s, so a plain sum suffices.  For
    # sub-32-bit activations the upcast is chunked so the f32 temporary stays
    # bounded (tb*C*chunk*4 bytes) instead of a full-tile copy.
    chunk = HW if itemsize >= 4 else min(HW, 2048)
    pooled = jnp.zeros((tb, C, 1), jnp.float32)
    for s in range(0, HW, chunk):          # static unroll; 1 iter for f32
        e = min(s + chunk, HW)
        pooled = pooled + jnp.sum(
            x_ref[:, :, s:e].astype(jnp.float32), axis=-1, keepdims=True)

    # --- Excitation: Linear(C->Cr, no bias) + ReLU, Linear(Cr->C) + Sigmoid. -
    # Computed as broadcast-multiply-reduce in the natural layout (C on
    # sublanes, Cr on lanes): tiny (tb,C,Cr) f32 intermediates, no relayouts.
    # h[b,j] = relu( sum_c pooled[b,c] * w1s[c,j] )
    h = jnp.sum(pooled * w1s_ref[...], axis=1, keepdims=True)       # (tb,1,Cr)
    h = jnp.maximum(h, 0.0)
    # s[b,c] = sigmoid( sum_j h[b,j] * w2[c,j] )
    gate = jnp.sum(h * w2_ref[...], axis=-1, keepdims=True)         # (tb,C,1)
    gate = jax.nn.sigmoid(gate)

    # --- Scale: trailing-1 lane broadcast of the per-channel gate over HW. ---
    # Native-dtype multiply (re-read from the ref -> short live range).  For
    # bf16 this differs from "multiply in f32 then downcast" by <= 1 ulp.
    o_ref[...] = x_ref[...] * gate.astype(o_ref.dtype)


def _vmem_capacity_bytes():
    try:
        return int(pltpu.get_tpu_info().vmem_capacity_bytes)
    except Exception:
        return 64 << 20   # conservative fallback (v7x per-TensorCore VMEM)


def _pick_batch_tile(B, per_sample_cost, budget_bytes,
                     min_steps=8, min_block_cost=8 << 20):
    """Largest tb that divides B and fits the budget; prefer leaving >=
    `min_steps` grid steps (pipeline overlap + both v7x TensorCores) unless
    that would shrink the per-step footprint below ~min_block_cost."""
    divisors = [d for d in range(1, B + 1) if B % d == 0]
    fitting = [d for d in divisors if d * per_sample_cost <= budget_bytes]
    if not fitting:
        # TODO(synk): single sample exceeds the budget -> needs the two-pass
        # HW-tiled variant.  Fall back to tb=1 with an honest vmem_limit.
        return 1
    piped = [d for d in fitting
             if B // d >= min_steps and d * per_sample_cost >= min_block_cost]
    return max(piped) if piped else max(fitting)


def se_layer(x, w1, w2):
    """SELayer forward, NCHW interface matching the PyTorch module.

    x : (B, C, H, W)
    w1: (C//r, C)   first nn.Linear weight (PyTorch (out, in) layout)
    w2: (C, C//r)   second nn.Linear weight
    """
    B, C, H, W = x.shape
    HW = H * W
    Cr, C_in = w1.shape
    assert C_in == C and w2.shape == (C, Cr)

    itemsize = jnp.dtype(x.dtype).itemsize
    per_sample_act = C * HW * itemsize
    pool_chunk = HW if itemsize >= 4 else min(HW, 2048)
    per_sample_pool_tmp = C * pool_chunk * 4 if itemsize < 4 else 0
    # in + out activation slabs (each double-buffered) + bounded pooling temp.
    per_sample_cost = 4 * per_sample_act + per_sample_pool_tmp

    cap = _vmem_capacity_bytes()                 # 128 MiB v5e/v6e, 64 MiB v7x
    budget = int(0.55 * cap)                     # headroom for weights/temps/scratch
    tb = _pick_batch_tile(B, per_sample_cost, budget)
    grid_b = B // tb

    weight_bytes = 2 * 2 * C * Cr * 4            # two f32 weights, double-buffered
    gate_tmp = 4 * tb * C * max(Cr, 8) * 4       # (tb,C,Cr)-ish f32 intermediates
    vmem_limit = tb * per_sample_cost + weight_bytes + gate_tmp + (2 << 20)
    vmem_limit = int(min(max(vmem_limit, 16 << 20), int(0.92 * cap)))

    # Weight prep happens once in XLA (not per grid step): transpose, fold the
    # 1/HW pooling factor into the first layer, and pre-cast to f32.
    w1s = w1.T.astype(jnp.float32) * (1.0 / float(HW))   # (C, Cr)
    w2f = w2.astype(jnp.float32)                         # (C, Cr)

    x3 = x.reshape(B, C, HW)     # free view -- NCHW end-to-end, no transpose

    out3 = pl.pallas_call(
        se_kernel,
        out_shape=jax.ShapeDtypeStruct((B, C, HW), x.dtype),
        grid_spec=pltpu.PrefetchScalarGridSpec(
            num_scalar_prefetch=0,
            grid=(grid_b,),
            in_specs=[
                pl.BlockSpec((tb, C, HW), lambda b: (b, 0, 0)),
                pl.BlockSpec((C, Cr), lambda b: (0, 0)),
                pl.BlockSpec((C, Cr), lambda b: (0, 0)),
            ],
            out_specs=pl.BlockSpec((tb, C, HW), lambda b: (b, 0, 0)),
        ),
        compiler_params=pltpu.CompilerParams(
            dimension_semantics=("parallel",),
            vmem_limit_bytes=vmem_limit),
    )(x3, w1s, w2f)

    return out3.reshape(B, C, H, W)   # free view


def se_layer_ref(x, w1, w2):
    """Pure-JAX reference mirroring the PyTorch SELayer forward."""
    pooled = jnp.mean(x, axis=(2, 3))                    # (B, C)
    h = jnp.maximum(pooled @ w1.T, 0.0)                  # (B, C//r)
    s = jax.nn.sigmoid(h @ w2.T)                         # (B, C)
    return x * s[:, :, None, None]


if __name__ == "__main__":
    # Shapes consistent with SELayer(channel=32, reduction=16).
    B, C, H, W = 2, 32, 16, 16
    reduction = 16
    Cr = C // reduction  # = 2

    key = jax.random.PRNGKey(0)
    kx, k1, k2 = jax.random.split(key, 3)

    x = jax.random.normal(kx, (B, C, H, W), dtype=jnp.float32)
    # PyTorch nn.Linear weight layout: (out_features, in_features).
    w1 = jax.random.normal(k1, (Cr, C), dtype=jnp.float32) * 0.1
    w2 = jax.random.normal(k2, (C, Cr), dtype=jnp.float32) * 0.1

    se_fn = jax.jit(se_layer)
    out = jax.block_until_ready(se_fn(x, w1, w2))

    ref = se_layer_ref(x, w1, w2)
    assert out.shape == (B, C, H, W)
    assert jnp.allclose(out, ref, atol=1e-5, rtol=1e-5), "mismatch vs reference"

    print("KERNEL_OK")
</pallas_src>

<mosaic_0001>
module attributes {stable_mosaic.version = 11 : i64} {
  func.func @se_kernel(%arg0: i32, %arg1: memref<2x32x256xf32, #tpu.memory_space<vmem>>, %arg2: memref<32x2xf32, #tpu.memory_space<vmem>>, %arg3: memref<32x2xf32, #tpu.memory_space<vmem>>, %arg4: memref<2x32x256xf32, #tpu.memory_space<vmem>>) attributes {dimension_semantics = [#tpu.dimension_semantics<parallel>], iteration_bounds = array<i64: 1>, scalar_prefetch = 0 : i64, scratch_operands = 0 : i64, tpu.core_type = #tpu.core_type<tc>, window_params = [{transform_indices = @transform_0, window_bounds = array<i64: 2, 32, 256>}, {pipeline_mode = #tpu.pipeline_mode<synchronous>, transform_indices = @transform_1, window_bounds = array<i64: 32, 2>}, {pipeline_mode = #tpu.pipeline_mode<synchronous>, transform_indices = @transform_2, window_bounds = array<i64: 32, 2>}, {transform_indices = @transform_3, window_bounds = array<i64: 2, 32, 256>}]} {
    %cst = arith.constant 0.000000e+00 : f32
    %0 = vector.broadcast %cst : f32 to vector<2x32x1xf32>
    %c0 = arith.constant 0 : index
    %c0_0 = arith.constant 0 : index
    %c0_1 = arith.constant 0 : index
    %1 = vector.load %arg1[%c0, %c0_0, %c0_1] : memref<2x32x256xf32, #tpu.memory_space<vmem>>, vector<2x32x256xf32>
    %cst_2 = arith.constant dense<0.000000e+00> : vector<2x32xf32>
    %2 = vector.multi_reduction <add>, %1, %cst_2 [2] : vector<2x32x256xf32> to vector<2x32xf32>
    %3 = vector.shape_cast %2 : vector<2x32xf32> to vector<2x32x1xf32>
    %4 = arith.addf %0, %3 : vector<2x32x1xf32>
    %c0_3 = arith.constant 0 : index
    %c0_4 = arith.constant 0 : index
    %5 = vector.load %arg2[%c0_3, %c0_4] : memref<32x2xf32, #tpu.memory_space<vmem>>, vector<32x2xf32>
    %6 = vector.shape_cast %5 : vector<32x2xf32> to vector<1x32x2xf32>
    %7 = vector.broadcast %4 : vector<2x32x1xf32> to vector<2x32x2xf32>
    %8 = vector.broadcast %6 : vector<1x32x2xf32> to vector<2x32x2xf32>
    %9 = arith.mulf %7, %8 : vector<2x32x2xf32>
    %cst_5 = arith.constant dense<0.000000e+00> : vector<2x2xf32>
    %10 = vector.multi_reduction <add>, %9, %cst_5 [1] : vector<2x32x2xf32> to vector<2x2xf32>
    %11 = vector.shape_cast %10 : vector<2x2xf32> to vector<2x1x2xf32>
    %cst_6 = arith.constant 0.000000e+00 : f32
    %12 = vector.broadcast %cst_6 : f32 to vector<2x1x2xf32>
    %13 = arith.maximumf %11, %12 : vector<2x1x2xf32>
    %c0_7 = arith.constant 0 : index
    %c0_8 = arith.constant 0 : index
    %14 = vector.load %arg3[%c0_7, %c0_8] : memref<32x2xf32, #tpu.memory_space<vmem>>, vector<32x2xf32>
    %15 = vector.shape_cast %14 : vector<32x2xf32> to vector<1x32x2xf32>
    %16 = vector.broadcast %13 : vector<2x1x2xf32> to vector<2x32x2xf32>
    %17 = vector.broadcast %15 : vector<1x32x2xf32> to vector<2x32x2xf32>
    %18 = arith.mulf %16, %17 : vector<2x32x2xf32>
    %cst_9 = arith.constant dense<0.000000e+00> : vector<2x32xf32>
    %19 = vector.multi_reduction <add>, %18, %cst_9 [2] : vector<2x32x2xf32> to vector<2x32xf32>
    %20 = vector.shape_cast %19 : vector<2x32xf32> to vector<2x32x1xf32>
    %21 = arith.negf %20 : vector<2x32x1xf32>
    %22 = math.exp %21 : vector<2x32x1xf32>
    %cst_10 = arith.constant 1.000000e+00 : f32
    %23 = vector.broadcast %cst_10 : f32 to vector<2x32x1xf32>
    %24 = arith.addf %23, %22 : vector<2x32x1xf32>
    %25 = arith.divf %23, %24 : vector<2x32x1xf32>
    %c0_11 = arith.constant 0 : index
    %c0_12 = arith.constant 0 : index
    %c0_13 = arith.constant 0 : index
    %26 = vector.load %arg1[%c0_11, %c0_12, %c0_13] : memref<2x32x256xf32, #tpu.memory_space<vmem>>, vector<2x32x256xf32>
    %27 = vector.broadcast %25 : vector<2x32x1xf32> to vector<2x32x256xf32>
    %28 = arith.mulf %26, %27 : vector<2x32x256xf32>
    %c0_14 = arith.constant 0 : index
    %c0_15 = arith.constant 0 : index
    %c0_16 = arith.constant 0 : index
    %29 = vector.load %arg4[%c0_14, %c0_15, %c0_16] : memref<2x32x256xf32, #tpu.memory_space<vmem>>, vector<2x32x256xf32>
    tpu.vector_store %arg4[%c0_14, %c0_15, %c0_16], %28 {strides = array<i32>} : memref<2x32x256xf32, #tpu.memory_space<vmem>>, vector<2x32x256xf32>,
    return
  }
  func.func @transform_0(%arg0: i32) -> (i32, i32, i32) {
    %c0_i32 = arith.constant 0 : i32
    %c0_i32_0 = arith.constant 0 : i32
    %c0_i32_1 = arith.constant 0 : i32
    return %arg0, %c0_i32, %c0_i32_0 : i32, i32, i32
  }
  func.func @transform_1(%arg0: i32) -> (i32, i32) {
    %c0_i32 = arith.constant 0 : i32
    %c0_i32_0 = arith.constant 0 : i32
    %c0_i32_1 = arith.constant 0 : i32
    return %c0_i32, %c0_i32_0 : i32, i32
  }
  func.func @transform_2(%arg0: i32) -> (i32, i32) {
    %c0_i32 = arith.constant 0 : i32
    %c0_i32_0 = arith.constant 0 : i32
    %c0_i32_1 = arith.constant 0 : i32
    return %c0_i32, %c0_i32_0 : i32, i32
  }
  func.func @transform_3(%arg0: i32) -> (i32, i32, i32) {
    %c0_i32 = arith.constant 0 : i32
    %c0_i32_0 = arith.constant 0 : i32
    %c0_i32_1 = arith.constant 0 : i32
    return %arg0, %c0_i32, %c0_i32_0 : i32, i32, i32
  }
}

</mosaic_0001>

<bundles_post_ra>
// kernel: se_layer.1
= control target key start
LH: loop header
LB: loop body
LE: loop exit
PB: predicated region body
PF: predicated region fallthrough
CT: control target
= control target key end

     0   :  { %vm74_vm0 = vcmask 15360   ;;  %s483_s0 = inlined_call_operand.vmem [shape: f32[2,32,256], index: 0, kind: input, shape index: {}]   ;;  %s484_s1 = inlined_call_operand.vmem [shape: f32[32,2], index: 1, kind: input, shape index: {}]   ;;  %s485_s2 = inlined_call_operand.vmem [shape: f32[32,2], index: 2, kind: input, shape index: {}]   ;;  %s486_s3 = inlined_call_operand.vmem [shape: f32[2,32,256], index: 3, kind: output, shape index: {}]  }
   0x1   :  { %v286_v0 = vld [vmem:[%s483_s0 + $0x40] sm:$0xff]  ;;  %v291_v1 = vld [vmem:[%s483_s0 + $0x48] sm:$0xff]  ;;  %v308_v5 = vld [vmem:[%s483_s0 + $0x50] sm:$0xff] }
   0x2   :  { %v296_v2 = vld [vmem:[%s483_s0] sm:$0xff]  ;;  %v42_v3 = vadd.f32 %v291_v1, %v286_v0  ;;  %v303_v4 = vld [vmem:[%s483_s0 + $0x8] sm:$0xff]  ;;  %v313_v6 = vld [vmem:[%s483_s0 + $0x58] sm:$0xff] }
   0x3   :  { %v30_v7 = vadd.f32 %v303_v4, %v296_v2  ;;  %v320_v8 = vld [vmem:[%s483_s0 + $0x10] sm:$0xff]  ;;  %v325_v9 = vld [vmem:[%s483_s0 + $0x18] sm:$0xff]  ;;  %v45_v10 = vadd.f32 %v313_v6, %v308_v5  ;;  %v334_v12 = vld [vmem:[%s483_s0 + $0x60] sm:$0xff] }
   0x4   :  { %43 = vadd.xlane.f32.xlu1 %v42_v3  ;;  %v33_v11 = vadd.f32 %v325_v9, %v320_v8  ;;  %v339_v13 = vld [vmem:[%s483_s0 + $0x68] sm:$0xff]  ;;  %v344_v14 = vld [vmem:[%s483_s0 + $0x20] sm:$0xff]  ;;  %v358_v18 = vld [vmem:[%s483_s0 + $0x70] sm:$0xff] }
   0x5   :  { %31 = vadd.xlane.f32.xlu0 %v30_v7  ;;  %v349_v15 = vld [vmem:[%s483_s0 + $0x28] sm:$0xff]  ;;  %v48_v16 = vadd.f32 %v339_v13, %v334_v12  ;;  %v363_v19 = vld [vmem:[%s483_s0 + $0x78] sm:$0xff]  ;;  %v368_v20 = vld [vmem:[%s483_s0 + $0x30] sm:$0xff] }
   0x6   :  { %v36_v17 = vadd.f32 %v349_v15, %v344_v14  ;;  %v373_v21 = vld [vmem:[%s483_s0 + $0x38] sm:$0xff]  ;;  %v51_v22 = vadd.f32 %v363_v19, %v358_v18  ;;  %v62_v24 = vld [vmem:[%s484_s1] sm:$0xff]  ;;  %v63_v28 = vld [vmem:[%s484_s1 + $0x8] sm:$0xff] }
   0x7   :  { %v39_v23 = vadd.f32 %v373_v21, %v368_v20  ;;  %v64_v35 = vld [vmem:[%s484_s1 + $0x10] sm:$0xff]  ;;  %v65_v43 = vld [vmem:[%s484_s1 + $0x18] sm:$0xff] }
   0x8   :  { %46 = vadd.xlane.f32.xlu1 %v45_v10 }
   0x9   :  { %34 = vadd.xlane.f32.xlu0 %v33_v11 }
   0xc   :  { %49 = vadd.xlane.f32.xlu1 %v48_v16 }
   0xd   :  { %37 = vadd.xlane.f32.xlu0 %v36_v17 }
  0x10   :  { %52 = vadd.xlane.f32.xlu1 %v51_v22  ;;  %v104_v22 = vld [vmem:[%s485_s2 + $0x8] sm:$0xff] }
  0x11   :  { %40 = vadd.xlane.f32.xlu0 %v39_v23  ;;  %v103_v23 = vld [vmem:[%s485_s2] sm:$0xff] }
  0x91   :  { %v44_v25 = vpop.xlane.xlu1 %43 }
  0x92   :  { %v70_v26 = vmul.f32 %v62_v24, %v44_v25  ;;  %v32_v27 = vpop.xlane.xlu0 %31  ;;  %v106_v25 = vld [vmem:[%s485_s2 + $0x18] sm:$0xff] }
  0x93   :  { %v66_v36 = vmul.f32 %v62_v24, %v32_v27 }
  0x94   :  { %v88_v30 = vsel %vm74_vm0, %v70_v26, 0.0  ;;  %v105_v26 = vld [vmem:[%s485_s2 + $0x10] sm:$0xff] }
  0x95   :  { %v47_v29 = vpop.xlane.xlu1 %46  ;;  %v75_v45 = vsel %vm74_vm0, %v66_v36, 0.0 }
  0x96   :  { %v71_v31 = vmul.f32 %v63_v28, %v47_v29  ;;  %v35_v32 = vpop.xlane.xlu0 %34 }
  0x97   :  { %v67_v33 = vmul.f32 %v63_v28, %v35_v32 }
  0x98   :  { %v89_v34 = vsel %vm74_vm0, %v71_v31, 0.0 }
  0x99   :  { %v90_v37 = vadd.f32 %v89_v34, %v88_v30  ;;  %v50_v38 = vpop.xlane.xlu1 %49  ;;  %v76_v41 = vsel %vm74_vm0, %v67_v33, 0.0 }
  0x9a   :  { %v72_v39 = vmul.f32 %v64_v35, %v50_v38  ;;  %v38_v40 = vpop.xlane.xlu0 %37  ;;  %v77_v49 = vadd.f32 %v76_v41, %v75_v45 }
  0x9b   :  { %v68_v42 = vmul.f32 %v64_v35, %v38_v40 }
  0x9c   :  { %v91_v44 = vsel %vm74_vm0, %v72_v39, 0.0 }
  0x9d   :  { %v92_v46 = vadd.f32 %v91_v44, %v90_v37  ;;  %v78_v47 = vsel %vm74_vm0, %v68_v42, 0.0  ;;  %v53_v48 = vpop.xlane.xlu1 %52 }
  0x9e   :  { %v73_v50 = vmul.f32 %v65_v43, %v53_v48  ;;  %v41_v51 = vpop.xlane.xlu0 %40  ;;  %v79_v53 = vadd.f32 %v78_v47, %v77_v49 }
  0x9f   :  { %v69_v52 = vmul.f32 %v65_v43, %v41_v51 }
  0xa0   :  { %v93_v54 = vsel %vm74_vm0, %v73_v50, 0.0 }
  0xa1   :  { %v94_v55 = vadd.f32 %v93_v54, %v92_v46  ;;  %v80_v56 = vsel %vm74_vm0, %v69_v52, 0.0 }
  0xa2   :  { %v81_v57 = vadd.f32 %v80_v56, %v79_v53 }
  0xa3   :  { %v95_v58 = vrot.slane %v94_v55, 4 }
  0xa4   :  { %v82_v59 = vrot.slane %v81_v57, 4 }
  0xa5   :  { %v96_v60 = vadd.f32 %v95_v58, %v94_v55 }
  0xa6   :  { %v83_v61 = vadd.f32 %v82_v59, %v81_v57 }
  0xa7   :  { %v97_v62 = vrot.slane %v96_v60, 2 }
  0xa8   :  { %v84_v63 = vrot.slane %v83_v61, 2 }
  0xa9   :  { %v98_v3 = vadd.f32 %v97_v62, %v96_v60 }
  0xaa   :  { %v85_v7 = vadd.f32 %v84_v63, %v83_v61 }
  0xab   :  { %v99_v10 = vrot.slane %v98_v3, 1 }
  0xac   :  { %v86_v11 = vrot.slane %v85_v7, 1 }
  0xad   :  { %v100_v17 = vadd.f32 %v99_v10, %v98_v3 }
  0xae   :  { %v87_v16 = vadd.f32 %v86_v11, %v85_v7 }
  0xaf   :  { %v102_v29 = vmax.f32 %v100_v17, 0.0 }
  0xb0   :  { %v101_v24 = vmax.f32 %v87_v16, 0.0 }
  0xb1   :  { %v112_v36 = vmul.f32 %v104_v22, %v102_v29  ;;  %v111_v37 = vmul.f32 %v103_v23, %v102_v29  ;;  %v114_v40 = vmul.f32 %v106_v25, %v102_v29  ;;  %v113_v41 = vmul.f32 %v105_v26, %v102_v29 }
  0xb2   :  { %v108_v27 = vmul.f32 %v104_v22, %v101_v24  ;;  %v107_v28 = vmul.f32 %v103_v23, %v101_v24  ;;  %v110_v32 = vmul.f32 %v106_v25, %v101_v24  ;;  %v109_v33 = vmul.f32 %v105_v26, %v101_v24 }
  0xb3   :  { %v130_v38 = vsel %vm74_vm0, %v112_v36, 0.0  ;;  %v127_v39 = vsel %vm74_vm0, %v111_v37, 0.0  ;;  %v136_v42 = vsel %vm74_vm0, %v114_v40, 0.0  ;;  %v133_v43 = vsel %vm74_vm0, %v113_v41, 0.0 }
  0xb4   :  { %v118_v30 = vsel %vm74_vm0, %v108_v27, 0.0  ;;  %v115_v31 = vsel %vm74_vm0, %v107_v28, 0.0  ;;  %v124_v34 = vsel %vm74_vm0, %v110_v32, 0.0  ;;  %v121_v35 = vsel %vm74_vm0, %v109_v33, 0.0 }
  0xb5   :  { %119 = vadd.xlane.f32.xlu1 %v118_v30  ;;  %116 = vadd.xlane.f32.xlu0 %v115_v31 }
  0xb9   :  { %125 = vadd.xlane.f32.xlu1 %v124_v34  ;;  %122 = vadd.xlane.f32.xlu0 %v121_v35 }
  0xbd   :  { %131 = vadd.xlane.f32.xlu1 %v130_v38  ;;  %128 = vadd.xlane.f32.xlu0 %v127_v39 }
  0xc1   :  { %137 = vadd.xlane.f32.xlu1 %v136_v42  ;;  %134 = vadd.xlane.f32.xlu0 %v133_v43 }
 0x142   :  { %v120_v44 = vpop.xlane.xlu1 %119  ;;  %v117_v45 = vpop.xlane.xlu0 %116 }
 0x143   :  { %v224_v46 = vmul.f32 -1.442695, %v120_v44  ;;  %v223_v47 = vmul.f32 -1.442695, %v117_v45 }
 0x145   :  { %231 = vpow2.f32 %v224_v46 }
 0x146   :  { %233 = vpow2.f32 %v223_v47  ;;  %v126_v48 = vpop.xlane.xlu1 %125  ;;  %v123_v49 = vpop.xlane.xlu0 %122 }
 0x147   :  { %v226_v50 = vmul.f32 -1.442695, %v126_v48  ;;  %v225_v51 = vmul.f32 -1.442695, %v123_v49 }
 0x149   :  { %235 = vpow2.f32 %v226_v50 }
 0x14a   :  { %237 = vpow2.f32 %v225_v51  ;;  %v132_v52 = vpop.xlane.xlu1 %131  ;;  %v129_v53 = vpop.xlane.xlu0 %128 }
 0x14b   :  { %v228_v54 = vmul.f32 -1.442695, %v132_v52  ;;  %v227_v55 = vmul.f32 -1.442695, %v129_v53 }
 0x14d   :  { %239 = vpow2.f32 %v228_v54 }
 0x14e   :  { %241 = vpow2.f32 %v227_v55  ;;  %v138_v56 = vpop.xlane.xlu1 %137  ;;  %v135_v57 = vpop.xlane.xlu0 %134 }
 0x14f   :  { %v232_v58 = vpop.eup %231  ;;  %v230_v59 = vmul.f32 -1.442695, %v138_v56  ;;  %v229_v62 = vmul.f32 -1.442695, %v135_v57 }
 0x150   :  { %v234_v60 = vpop.eup %233  ;;  %v164_v61 = vadd.f32 1.0, %v232_v58 }
 0x151   :  { %v163_v63 = vadd.f32 1.0, %v234_v60  ;;  %243 = vpow2.f32 %v230_v59 }
 0x152   :  { %245 = vrcp.f32 %v164_v61 }
 0x153   :  { %v236_v3 = vpop.eup %235  ;;  %247 = vrcp.f32 %v163_v63 }
 0x154   :  { %v238_v7 = vpop.eup %237  ;;  %v166_v10 = vadd.f32 1.0, %v236_v3  ;;  %249 = vpow2.f32 %v229_v62 }
 0x155   :  { %v165_v11 = vadd.f32 1.0, %v238_v7 }
 0x156   :  { %251 = vrcp.f32 %v166_v10 }
 0x157   :  { %v240_v16 = vpop.eup %239  ;;  %253 = vrcp.f32 %v165_v11 }
 0x158   :  { %v242_v17 = vpop.eup %241  ;;  %v168_v22 = vadd.f32 1.0, %v240_v16 }
 0x159   :  { %v167_v23 = vadd.f32 1.0, %v242_v17 }
 0x15a   :  { %255 = vrcp.f32 %v168_v22 }
 0x15b   :  { %v244_v24 = vpop.eup %243  ;;  %257 = vrcp.f32 %v167_v23 }
 0x15c   :  { %v246_v25 = vpop.eup %245  ;;  %v170_v26 = vadd.f32 1.0, %v244_v24 }
 0x15d   :  { %v248_v27 = vpop.eup %247  ;;  %v189_v28 = vmul.f32 %v246_v25, %v320_v8  ;;  %v190_v29 = vmul.f32 %v246_v25, %v325_v9 }
 0x15e   :  { %v250_v30 = vpop.eup %249  ;;  %v187_v31 = vmul.f32 %v248_v27, %v296_v2  ;;  %v188_v32 = vmul.f32 %v248_v27, %v303_v4  ;;  %259 = vrcp.f32 %v170_v26 }
 0x15f   :  { %205 = vst [vmem:[%s486_s3 + $0x10] sm:$0xff] %v189_v28  ;;  %206 = vst [vmem:[%s486_s3 + $0x18] sm:$0xff] %v190_v29  ;;  %v169_v33 = vadd.f32 1.0, %v250_v30 }
 0x160   :  { %v252_v34 = vpop.eup %251  ;;  %203 = vst [vmem:[%s486_s3] sm:$0xff] %v187_v31  ;;  %204 = vst [vmem:[%s486_s3 + $0x8] sm:$0xff] %v188_v32 }
 0x161   :  { %v254_v2 = vpop.eup %253  ;;  %v193_v4 = vmul.f32 %v252_v34, %v368_v20  ;;  %v194_v8 = vmul.f32 %v252_v34, %v373_v21  ;;  %261 = vrcp.f32 %v169_v33 }
 0x162   :  { %v191_v9 = vmul.f32 %v254_v2, %v344_v14  ;;  %v192_v35 = vmul.f32 %v254_v2, %v349_v15 }
 0x163   :  { %209 = vst [vmem:[%s486_s3 + $0x30] sm:$0xff] %v193_v4  ;;  %210 = vst [vmem:[%s486_s3 + $0x38] sm:$0xff] %v194_v8 }
 0x164   :  { %v256_v36 = vpop.eup %255  ;;  %207 = vst [vmem:[%s486_s3 + $0x20] sm:$0xff] %v191_v9  ;;  %208 = vst [vmem:[%s486_s3 + $0x28] sm:$0xff] %v192_v35 }
 0x165   :  { %v258_v14 = vpop.eup %257  ;;  %v197_v15 = vmul.f32 %v256_v36, %v308_v5  ;;  %v198_v20 = vmul.f32 %v256_v36, %v313_v6 }
 0x166   :  { %v195_v21 = vmul.f32 %v258_v14, %v286_v0  ;;  %v196_v37 = vmul.f32 %v258_v14, %v291_v1 }
 0x167   :  { %213 = vst [vmem:[%s486_s3 + $0x50] sm:$0xff] %v197_v15  ;;  %214 = vst [vmem:[%s486_s3 + $0x58] sm:$0xff] %v198_v20 }
 0x168   :  { %v260_v38 = vpop.eup %259  ;;  %211 = vst [vmem:[%s486_s3 + $0x40] sm:$0xff] %v195_v21  ;;  %212 = vst [vmem:[%s486_s3 + $0x48] sm:$0xff] %v196_v37 }
 0x169   :  { %v201_v0 = vmul.f32 %v260_v38, %v358_v18  ;;  %v202_v1 = vmul.f32 %v260_v38, %v363_v19 }
 0x16b   :  { %v262_v5 = vpop.eup %261  ;;  %217 = vst [vmem:[%s486_s3 + $0x70] sm:$0xff] %v201_v0  ;;  %218 = vst [vmem:[%s486_s3 + $0x78] sm:$0xff] %v202_v1 }
 0x16c   :  { %v199_v6 = vmul.f32 %v262_v5, %v334_v12  ;;  %v200_v39 = vmul.f32 %v262_v5, %v339_v13 }
 0x16e   :  { %215 = vst [vmem:[%s486_s3 + $0x60] sm:$0xff] %v199_v6  ;;  %216 = vst [vmem:[%s486_s3 + $0x68] sm:$0xff] %v200_v39 }

</bundles_post_ra>
